<compile_context>
chip_gen: v6e
topology: v6e:2x2x1
jax: 0.10.0
libtpu: 0.0.40
codegen_flags: <defaults>
</compile_context>

<pallas_src>
import jax
import jax.numpy as jnp
from jax.experimental import pallas as pl
from jax.experimental.pallas import tpu as pltpu


_TARGET_BLOCK_BYTES = 3 * 1024 * 1024     # target bytes per x block (double-buffered)
_VMEM_LIMIT_BYTES = 32 * 1024 * 1024      # explicit scoped-VMEM cap (safe on v5e/v6e/v7x)
_SMALL_BYTES = 256 * 1024                 # below this, plain XLA fused add wins
# TODO(synk): make _SMALL_BYTES generation-aware (raise to ~1 MiB on v7x via get_tpu_info).


def _round_up(v, m):
    return ((v + m - 1) // m) * m


def _add_bias_kernel(x_ref, b_ref, o_ref):
    # x: (tr, tl) in x.dtype; b: (1, tl) f32 (sublane broadcast is free).
    # Upcast, add in f32, cast back on store.
    x = x_ref[...].astype(jnp.float32)
    o_ref[...] = (x + b_ref[...]).astype(o_ref.dtype)


def _pick_tiles(R, L, itemsize):
    """Byte-targeted (row, lane) tile sizes obeying the (8, 128) / full-dim rule."""
    target = _TARGET_BLOCK_BYTES
    # Lane tile: prefer the full lane extent (lane-dense output, bias read once
    # per lane tile); only tile lanes when even an 8-row block would blow the
    # byte budget.
    if L <= 128 or L * itemsize * 8 <= target:
        tl = L
    else:
        tl = ((target // (8 * itemsize)) // 128) * 128
        tl = max(128, tl)
    # Row tile: fill the remaining byte budget.
    if R <= 8:
        tr = R
    else:
        tr = (target // (tl * itemsize)) // 8 * 8
        tr = max(8, min(tr, R))
    return tr, tl


def _ensure_two_steps(R, L, tr, tl):
    """v7x megacore: make sure there are >= 2 parallel grid steps if possible."""
    if pl.cdiv(R, tr) * pl.cdiv(L, tl) >= 2:
        return tr, tl
    if R >= 16:
        tr = _round_up(pl.cdiv(R, 2), 8)       # multiple of 8, < R -> 2 row steps
    elif L >= 256:
        tl = _round_up(pl.cdiv(L, 2), 128)     # multiple of 128, < L -> 2 lane steps
    return tr, tl


def _pallas_add_bias_2d(x2, b_row):
    """x2: (R, L); b_row: (1, L) f32. Returns x2 + b_row (broadcast), dtype of x2."""
    R, L = x2.shape
    itemsize = jnp.dtype(x2.dtype).itemsize
    tr, tl = _pick_tiles(R, L, itemsize)
    tr, tl = _ensure_two_steps(R, L, tr, tl)

    # Grid ordered (lane, row) with rows innermost: the bias block index is
    # constant across the inner axis, so its DMA is not re-issued per row tile.
    grid = (pl.cdiv(L, tl), pl.cdiv(R, tr))

    cost = pl.CostEstimate(
        flops=R * L,
        transcendentals=0,
        bytes_accessed=2 * R * L * itemsize + L * 4,
    )

    return pl.pallas_call(
        _add_bias_kernel,
        out_shape=jax.ShapeDtypeStruct(x2.shape, x2.dtype),
        grid=grid,
        in_specs=[
            pl.BlockSpec((tr, tl), lambda j, i: (i, j)),
            pl.BlockSpec((1, tl), lambda j, i: (0, j)),
        ],
        out_specs=pl.BlockSpec((tr, tl), lambda j, i: (i, j)),
        compiler_params=pltpu.CompilerParams(
            dimension_semantics=("parallel", "parallel"),
            vmem_limit_bytes=_VMEM_LIMIT_BYTES,
        ),
        cost_estimate=cost,
    )(x2, b_row)


class AddBias:
    """JAX/Pallas port of the PyTorch AddBias module (PPO)."""

    def __init__(self, bias, *, min_pallas_bytes=_SMALL_BYTES):
        # matches nn.Parameter(bias.unsqueeze(1)) -> stored as (C, 1), f32
        self._bias = jnp.asarray(bias, dtype=jnp.float32).reshape(-1, 1)
        self._min_pallas_bytes = min_pallas_bytes

    def __call__(self, x):
        assert x.ndim in (2, 4), "AddBias expects 2-D (N, C) or 4-D (N, C, H, W) input"
        C = self._bias.shape[0]

        nbytes = x.size * jnp.dtype(x.dtype).itemsize
        if nbytes < self._min_pallas_bytes:
            # Tiny tensors: pallas_call overhead dwarfs the traffic; let XLA fuse.
            if x.ndim == 2:
                out = x.astype(jnp.float32) + self._bias.reshape(1, C)
            else:
                out = x.astype(jnp.float32) + self._bias.reshape(1, C, 1, 1)
            return out.astype(x.dtype)

        if x.ndim == 2:
            assert x.shape[1] == C
            # rows = batch (tiled), lanes = C; lane-resident bias broadcast down rows.
            return _pallas_add_bias_2d(x, self._bias.reshape(1, C))

        # 4-D NCHW: flatten to (N, C*H*W) -> lane-dense output (unmasked stores
        # even when H*W is not a multiple of 128); bias expanded once per
        # channel block of H*W lanes (tiny, lane-resident, sublane-broadcast free).
        N, Cx, H, W = x.shape
        assert Cx == C
        HW = H * W
        xf = x.reshape(N, C * HW)
        b_row = jnp.repeat(self._bias.reshape(-1), HW).reshape(1, C * HW)
        out = _pallas_add_bias_2d(xf, b_row)
        return out.reshape(N, C, H, W)


if __name__ == "__main__":
    key = jax.random.PRNGKey(0)
    k_bias, k_x2, k_x4, k_bias2, k_x2b, k_x4b = jax.random.split(key, 6)

    # ---------------- small shapes (forced through the Pallas path) ----------
    C = 4
    bias = jax.random.normal(k_bias, (C,), dtype=jnp.float32)
    module_pallas = AddBias(bias, min_pallas_bytes=0)   # force Pallas
    module_auto = AddBias(bias)                         # default dispatch (XLA fast path here)

    # 2D case: (N, C)
    x2 = jax.random.normal(k_x2, (2, C), dtype=jnp.float32)
    y2 = jax.block_until_ready(module_pallas(x2))
    ref2 = x2 + bias.reshape(1, C)
    assert y2.shape == x2.shape and y2.dtype == x2.dtype
    assert jnp.allclose(y2, ref2, atol=1e-6), "2D mismatch (pallas)"
    assert jnp.allclose(jax.block_until_ready(module_auto(x2)), ref2, atol=1e-6), \
        "2D mismatch (fast path)"

    # 4D case: (N, C, H, W), NCHW
    x4 = jax.random.normal(k_x4, (2, C, 16, 16), dtype=jnp.float32)
    y4 = jax.block_until_ready(module_pallas(x4))
    ref4 = x4 + bias.reshape(1, C, 1, 1)
    assert y4.shape == x4.shape and y4.dtype == x4.dtype
    assert jnp.allclose(y4, ref4, atol=1e-6), "4D mismatch (pallas)"
    assert jnp.allclose(jax.block_until_ready(module_auto(x4)), ref4, atol=1e-6), \
        "4D mismatch (fast path)"

    # ------------- moderate shapes (exercise tiling, partial blocks, megacore split) ----
    # 2D: 1030 rows -> row split into 2 parallel steps + partial edge block.
    bias_wide = jax.random.normal(k_bias, (256,), dtype=jnp.float32)
    x2b = jax.random.normal(k_x2b, (1030, 256), dtype=jnp.float32)
    y2b = jax.block_until_ready(AddBias(bias_wide)(x2b))
    assert jnp.allclose(y2b, x2b + bias_wide.reshape(1, -1), atol=1e-6), "2D tiled mismatch"

    # 4D: (40, 16, 20, 20) -> lane-dense flatten to (40, 6400), row split into 2 steps.
    C2 = 16
    bias2 = jax.random.normal(k_bias2, (C2,), dtype=jnp.float32)
    x4b = jax.random.normal(k_x4b, (40, C2, 20, 20), dtype=jnp.float32)
    y4b = jax.block_until_ready(AddBias(bias2)(x4b))
    assert jnp.allclose(y4b, x4b + bias2.reshape(1, C2, 1, 1), atol=1e-6), "4D tiled mismatch"

    # bf16 path: bias stays f32 in-kernel, result cast back to bf16 on store.
    x2c = jax.random.normal(k_x2b, (512, 256), dtype=jnp.bfloat16)
    y2c = jax.block_until_ready(AddBias(bias_wide, min_pallas_bytes=0)(x2c))
    ref2c = (x2c.astype(jnp.float32) + bias_wide.reshape(1, -1)).astype(jnp.bfloat16)
    assert y2c.dtype == jnp.bfloat16
    assert jnp.allclose(y2c.astype(jnp.float32), ref2c.astype(jnp.float32), atol=1e-2), \
        "bf16 mismatch"

    print("KERNEL_OK")
</pallas_src>

<mosaic_0001>
module attributes {stable_mosaic.version = 11 : i64} {
  func.func @_add_bias_kernel(%arg0: i32, %arg1: i32, %arg2: memref<2x4xf32, #tpu.memory_space<vmem>>, %arg3: memref<1x4xf32, #tpu.memory_space<vmem>>, %arg4: memref<2x4xf32, #tpu.memory_space<vmem>>) attributes {dimension_semantics = [#tpu.dimension_semantics<parallel>, #tpu.dimension_semantics<parallel>], iteration_bounds = array<i64: 1, 1>, scalar_prefetch = 0 : i64, scratch_operands = 0 : i64, tpu.core_type = #tpu.core_type<tc>, window_params = [{transform_indices = @transform_0, window_bounds = array<i64: 2, 4>}, {transform_indices = @transform_1, window_bounds = array<i64: 1, 4>}, {transform_indices = @transform_2, window_bounds = array<i64: 2, 4>}]} {
    %c0 = arith.constant 0 : index
    %c0_0 = arith.constant 0 : index
    %0 = vector.load %arg2[%c0, %c0_0] : memref<2x4xf32, #tpu.memory_space<vmem>>, vector<2x4xf32>
    %c0_1 = arith.constant 0 : index
    %c0_2 = arith.constant 0 : index
    %1 = vector.load %arg3[%c0_1, %c0_2] : memref<1x4xf32, #tpu.memory_space<vmem>>, vector<1x4xf32>
    %2 = vector.broadcast %1 : vector<1x4xf32> to vector<2x4xf32>
    %3 = arith.addf %0, %2 : vector<2x4xf32>
    %c0_3 = arith.constant 0 : index
    %c0_4 = arith.constant 0 : index
    %4 = vector.load %arg4[%c0_3, %c0_4] : memref<2x4xf32, #tpu.memory_space<vmem>>, vector<2x4xf32>
    tpu.vector_store %arg4[%c0_3, %c0_4], %3 {strides = array<i32>} : memref<2x4xf32, #tpu.memory_space<vmem>>, vector<2x4xf32>,
    return
  }
  func.func @transform_0(%arg0: i32, %arg1: i32) -> (i32, i32) {
    %c0_i32 = arith.constant 0 : i32
    return %arg1, %arg0 : i32, i32
  }
  func.func @transform_1(%arg0: i32, %arg1: i32) -> (i32, i32) {
    %c0_i32 = arith.constant 0 : i32
    %c0_i32_0 = arith.constant 0 : i32
    return %c0_i32, %arg0 : i32, i32
  }
  func.func @transform_2(%arg0: i32, %arg1: i32) -> (i32, i32) {
    %c0_i32 = arith.constant 0 : i32
    return %arg1, %arg0 : i32, i32
  }
}

</mosaic_0001>

<bundles_post_ra>
// kernel: tpu_custom_call.1
= control target key start
LH: loop header
LB: loop body
LE: loop exit
PB: predicated region body
PF: predicated region fallthrough
CT: control target
= control target key end

     0   :  { %7 = vsyncpa [#allocation3], 0  ;;  %s123_s0 = inlined_call_operand.hbm [shape: f32[2,4], index: 0, kind: input, shape index: {}]   ;;  %s124_s1 = inlined_call_operand.vmem [shape: f32[1,4], index: 1, kind: input, shape index: {}]   ;;  %s125_s2 = inlined_call_operand.hbm [shape: f32[2,4], index: 2, kind: output, shape index: {}]  }
   0x1   :  { %8 = vsyncpa [#allocation4], 0  ;;  %s97_s9 = smov [#allocation2]  }
   0x2   :  { %s15_s10 = sshll.u32 %s97_s9, 4  ;;  %s16_s10 = int_to_ptr.vmem [resolvable:$true] %s15_s10 }
   0x3   :  { %s61_s11 = scalar_lea.vmem %s16_s10, 32  ;;  %p66_p1 = scmp.lt.s32.totalorder %s16_s10, %s16_s10 }
   0x4   :  { %p62_p0 = scmp.ne.s32.totalorder %s16_s10, %s61_s11  ;;  %p67_p2 = scmp.lt.s32.totalorder %s61_s11, %s61_s11 }
   0x6   :  { %p68_p3 = por %p67_p2, %p66_p1 }
   0x8   :  { %p69_p4 = pnand %p68_p3, %p62_p0 }
   0xa   :  { %72 = shalt.err (!%p69_p4)
}
   0xb   :  { %18 = dma.hbm_to_vmem [thread:$0]  %s123_s0, 32, %s16_s10, [#allocation3]  }
   0xc   :  { %93 = dma.done.wait [#allocation3], 32  }
   0xd   :  { %94 = vsyncadd [#allocation3], 4294967264  ;;  %s98_s14 = smov [#allocation5]   ;;  %v24_v0 = vld [vmem:[#allocation2] sm:$0x3]  ;;  %vm33_vm0 = vcmask 25600  }
   0xe   :  { %s41_s15 = sshll.u32 %s98_s14, 4  ;;  %v50_v1 = vld [vmem:[%s124_s1] ss:$0 sm:$0xff]  ;;  %s42_s15 = int_to_ptr.vmem [resolvable:$true] %s41_s15 }
   0xf   :  { %v32_v2 = vadd.f32 %v50_v1, %v24_v0  ;;  %s73_s18 = scalar_lea.vmem %s42_s15, 32  ;;  %p78_p6 = scmp.lt.s32.totalorder %s42_s15, %s42_s15 }
  0x10   :  { %p74_p5 = scmp.ne.s32.totalorder %s42_s15, %s73_s18  ;;  %p79_p7 = scmp.lt.s32.totalorder %s73_s18, %s73_s18 }
  0x11   :  { %34 = vst.msk [vmem:[#allocation5] sm:$0x3] %vm33_vm0, %v32_v2 }
  0x12   :  { %p80_p8 = por %p79_p7, %p78_p6 }
  0x14   :  { %p81_p9 = pnand %p80_p8, %p74_p5 }
  0x16   :  { %84 = shalt.err (!%p81_p9)
}
  0x17   :  { %44 = dma.vmem_to_hbm [thread:$0]  %s42_s15, 32, %s125_s2, [#allocation4]  }
  0x18   :  { %95 = dma.done.wait [#allocation4], 32  }
  0x19   :  { %96 = vsyncadd [#allocation4], 4294967264 }
  0x1a   :  { %48 = vsyncpa [#allocation3], 1 }
  0x1b   :  { %49 = vsyncpa [#allocation4], 1 }

</bundles_post_ra>
